<compile_context>
chip_gen: v7x
topology: tpu7x:2x2x1
jax: 0.10.0
libtpu: 0.0.40
codegen_flags: <defaults>
</compile_context>

<pallas_src>
import functools

import jax
import jax.numpy as jnp
from jax import lax
from jax.experimental import pallas as pl
from jax.experimental.pallas import tpu as pltpu


def _round_up(x, m):
    return ((x + m - 1) // m) * m


# --------------------------------------------------------------------------- #
# Kernel
# --------------------------------------------------------------------------- #
def _item_kernel(packed_ref, inv_ref, tab_ref, out_ref, *, n_idx, d, v_pad):
    """One B-tile: fused histogram -> one block-diagonal matmul -> mean scale."""
    bt = packed_ref.shape[0]
    packed = packed_ref[...]                                     # (bt, P) int32
    lane = lax.broadcasted_iota(jnp.int32, (bt, v_pad), 1)

    # Fused one-hot histogram over the block-diagonal vocabulary. Indices are
    # pre-offset on the producer side; padding entries (idx == 0) of the
    # multi-valued features land on their segment's base column, whose fused
    # table row is zero, so no masking is needed here.
    hist = (packed[:, 0:1] == lane).astype(jnp.float32)
    for l in range(1, n_idx):                                    # static unroll
        hist = hist + (packed[:, l:l + 1] == lane).astype(jnp.float32)

    # Single aligned MXU matmul produces the already-concatenated (bt, 4*D)
    # slab (lane-dense output, no concat / lane shuffles).
    acc = jnp.dot(hist, tab_ref[...], preferred_element_type=jnp.float32)

    # Mean pooling (divide-after-sum, same order as the reference) using the
    # precomputed 1/(count + 1e-8); the rate segment keeps scale 1.
    inv = inv_ref[...]                                           # (bt, 4) f32
    olane = lax.broadcasted_iota(jnp.int32, (bt, 4 * d), 1)
    scale = jnp.where(olane < d, 1.0, inv[:, 1:2])
    scale = jnp.where(olane < 2 * d, scale, inv[:, 2:3])
    scale = jnp.where(olane < 3 * d, scale, inv[:, 3:4])
    out_ref[...] = (acc * scale).astype(out_ref.dtype)


# --------------------------------------------------------------------------- #
# One-time parameter transform
# --------------------------------------------------------------------------- #
def make_fused_table(rate_tab, genre_tab, director_tab, actor_tab):
    """Pack the four embedding tables into one block-diagonal (V_pad, 4*D) table.

    Row 0 of each multi-valued table is zeroed so padding indices contribute
    nothing through the matmul. Call ONCE (parameter transform), not per step.
    Returns (fused_table, (off_genre, off_director, off_actor)).
    """
    D = rate_tab.shape[1]
    vr, vg, vd, va = (t.shape[0] for t in
                      (rate_tab, genre_tab, director_tab, actor_tab))
    vtot = vr + vg + vd + va
    v_pad = max(128, _round_up(vtot, 128))
    tab = jnp.zeros((v_pad, 4 * D), jnp.float32)
    tab = tab.at[0:vr, 0:D].set(rate_tab.astype(jnp.float32))
    tab = tab.at[vr:vr + vg, D:2 * D].set(
        genre_tab.astype(jnp.float32).at[0].set(0.0))
    tab = tab.at[vr + vg:vr + vg + vd, 2 * D:3 * D].set(
        director_tab.astype(jnp.float32).at[0].set(0.0))
    tab = tab.at[vr + vg + vd:vtot, 3 * D:4 * D].set(
        actor_tab.astype(jnp.float32).at[0].set(0.0))
    return tab, (vr, vr + vg, vr + vg + vd)


# --------------------------------------------------------------------------- #
# Producer-side (per-call, plain-JAX) input packing
# --------------------------------------------------------------------------- #
def pack_item_inputs(rate_idx, genre_idx, director_idx, actors_idx, offsets):
    """Pack the four index tensors into one pre-offset int32 array + inv-counts.

    Returns (packed_idx (B, P) int32, inv_counts (B, 4) f32, n_idx)."""
    off_g, off_d, off_a = offsets
    B = rate_idx.shape[0]
    cols = [rate_idx.reshape(B, 1).astype(jnp.int32),
            genre_idx.astype(jnp.int32) + off_g,
            director_idx.astype(jnp.int32) + off_d,
            actors_idx.astype(jnp.int32) + off_a]
    packed = jnp.concatenate(cols, axis=1)
    n_idx = packed.shape[1]
    n_pack = _round_up(n_idx, 16)                 # 64-byte rows
    if n_pack != n_idx:
        # Pad columns point at the (zeroed) genre padding row; the kernel never
        # reads them (loops over n_idx real columns) — this just keeps them safe.
        packed = jnp.pad(packed, ((0, 0), (0, n_pack - n_idx)),
                         constant_values=off_g)

    def inv_count(idx):
        cnt = jnp.sum((idx > 0).astype(jnp.float32), axis=-1, keepdims=True)
        return 1.0 / (cnt + 1e-8)                 # exact, same epsilon as ref

    inv = jnp.concatenate([jnp.ones((B, 1), jnp.float32),
                           inv_count(genre_idx),
                           inv_count(director_idx),
                           inv_count(actors_idx)], axis=1)
    return packed, inv, n_idx


# --------------------------------------------------------------------------- #
# Forward
# --------------------------------------------------------------------------- #
def item_forward(rate_idx, genre_idx, director_idx, actors_idx,
                 fused_tab, offsets, *, block_b=256):
    """Output: (B, 4*D) float32 = concat(rate, genre, director, actors)."""
    packed, inv, n_idx = pack_item_inputs(
        rate_idx, genre_idx, director_idx, actors_idx, offsets)
    B, n_pack = packed.shape
    v_pad, nd = fused_tab.shape
    d = nd // 4

    # Batch tile: multiple of 8 sublanes, <= block_b (vreg residency of the
    # (bt, v_pad) histogram on v5e), and >= 4 grid steps when B allows it
    # (>= 2 per v7x TensorCore + double-buffer overlap).
    if B <= 8:
        bt = B
    else:
        bt = max(8, min(block_b, _round_up(pl.cdiv(B, 4), 8)))
    # Simple VMEM guard for unusually large fused vocabularies.
    while bt > 8 and 3 * bt * v_pad * 4 > (16 << 20):
        bt //= 2
    # TODO(synk): for production MeLU vocab sizes (v_pad ~ 10k) tile the fused
    # vocab axis as an "arbitrary" reduction grid axis with a VMEM accumulator
    # instead of the whole-table BlockSpec below (whole-table + (bt, v_pad)
    # histogram would exceed v7x's 64 MiB VMEM).
    grid = (pl.cdiv(B, bt),)

    kernel = functools.partial(_item_kernel, n_idx=n_idx, d=d, v_pad=v_pad)

    cost = pl.CostEstimate(
        flops=2 * B * v_pad * nd,
        transcendentals=0,
        bytes_accessed=4 * (packed.size + inv.size + v_pad * nd + B * nd))

    return pl.pallas_call(
        kernel,
        out_shape=jax.ShapeDtypeStruct((B, nd), jnp.float32),
        grid_spec=pltpu.PrefetchScalarGridSpec(
            num_scalar_prefetch=0,
            grid=grid,
            in_specs=[
                pl.BlockSpec((bt, n_pack), lambda i: (i, 0)),        # packed idx
                pl.BlockSpec((bt, inv.shape[1]), lambda i: (i, 0)),  # inv counts
                pl.BlockSpec((v_pad, nd), lambda i: (0, 0)),         # whole table
            ],
            out_specs=pl.BlockSpec((bt, nd), lambda i: (i, 0)),
        ),
        compiler_params=pltpu.CompilerParams(
            dimension_semantics=("parallel",)),
        cost_estimate=cost,
    )(packed, inv, fused_tab)


# --------------------------------------------------------------------------- #
# Pure-JAX reference (mirrors the PyTorch forward)
# --------------------------------------------------------------------------- #
def _reference(rate_idx, genre_idx, director_idx, actors_idx,
               rate_tab, genre_tab, director_tab, actor_tab):
    def pool(feature, table):
        emb = table[feature]                                   # (B, L, D)
        mask = (feature > 0).astype(jnp.float32)               # (B, L)
        counts = jnp.sum(mask, axis=-1, keepdims=True) + 1e-8  # (B, 1)
        return jnp.sum(emb * mask[..., None], axis=1) / counts

    rate_emb = rate_tab[rate_idx]                              # (B, D)
    return jnp.concatenate([rate_emb,
                            pool(genre_idx, genre_tab),
                            pool(director_idx, director_tab),
                            pool(actors_idx, actor_tab)], axis=1)


if __name__ == "__main__":
    config = dict(num_rate=6, num_genre=10, num_director=12, num_actor=20,
                  embedding_dim=32)
    B, Lg, Ld, La = 8, 4, 3, 5
    D = config["embedding_dim"]

    key = jax.random.PRNGKey(0)
    k_rt, k_gt, k_dt, k_at, k_ri, k_gi, k_di, k_ai = jax.random.split(key, 8)

    # torch.nn.Embedding default init: N(0, 1)
    rate_tab = jax.random.normal(k_rt, (config["num_rate"] + 1, D), jnp.float32)
    genre_tab = jax.random.normal(k_gt, (config["num_genre"] + 1, D), jnp.float32)
    director_tab = jax.random.normal(k_dt, (config["num_director"] + 1, D), jnp.float32)
    actor_tab = jax.random.normal(k_at, (config["num_actor"] + 1, D), jnp.float32)

    rate_idx = jax.random.randint(k_ri, (B,), 0, config["num_rate"] + 1, jnp.int32)
    genre_idx = jax.random.randint(k_gi, (B, Lg), 0, config["num_genre"] + 1, jnp.int32)
    director_idx = jax.random.randint(k_di, (B, Ld), 0, config["num_director"] + 1, jnp.int32)
    actors_idx = jax.random.randint(k_ai, (B, La), 0, config["num_actor"] + 1, jnp.int32)

    # One-time parameter transform (outside the per-step path).
    fused_tab, offsets = make_fused_table(rate_tab, genre_tab, director_tab, actor_tab)
    fused_tab = jax.block_until_ready(fused_tab)

    out = item_forward(rate_idx, genre_idx, director_idx, actors_idx,
                       fused_tab, offsets)
    out = jax.block_until_ready(out)

    ref = _reference(rate_idx, genre_idx, director_idx, actors_idx,
                     rate_tab, genre_tab, director_tab, actor_tab)
    assert out.shape == (B, 4 * D), out.shape
    assert jnp.allclose(out, ref, atol=1e-5, rtol=1e-5), "mismatch vs reference"

    print("KERNEL_OK")
</pallas_src>

<mosaic_0001>
module attributes {stable_mosaic.version = 11 : i64} {
  func.func @_item_kernel(%arg0: i32, %arg1: memref<8x16xi32, #tpu.memory_space<vmem>>, %arg2: memref<8x4xf32, #tpu.memory_space<vmem>>, %arg3: memref<128x128xf32, #tpu.memory_space<vmem>>, %arg4: memref<8x128xf32, #tpu.memory_space<vmem>>) attributes {dimension_semantics = [#tpu.dimension_semantics<parallel>], iteration_bounds = array<i64: 1>, scalar_prefetch = 0 : i64, scratch_operands = 0 : i64, tpu.core_type = #tpu.core_type<tc>, window_params = [{transform_indices = @transform_0, window_bounds = array<i64: 8, 16>}, {transform_indices = @transform_1, window_bounds = array<i64: 8, 4>}, {pipeline_mode = #tpu.pipeline_mode<synchronous>, transform_indices = @transform_2, window_bounds = array<i64: 128, 128>}, {transform_indices = @transform_3, window_bounds = array<i64: 8, 128>}]} {
    %c0 = arith.constant 0 : index
    %c0_0 = arith.constant 0 : index
    %0 = vector.load %arg1[%c0, %c0_0] : memref<8x16xi32, #tpu.memory_space<vmem>>, vector<8x16xi32>
    %1 = tpu.iota {dimensions = array<i32: 1>} : vector<8x128xi32>
    %2 = vector.extract_strided_slice %0 {offsets = [0, 0], sizes = [8, 1], strides = [1, 1]} : vector<8x16xi32> to vector<8x1xi32>
    %3 = vector.broadcast %2 : vector<8x1xi32> to vector<8x128xi32>
    %4 = arith.cmpi eq, %3, %1 : vector<8x128xi32>
    %5 = arith.extui %4 : vector<8x128xi1> to vector<8x128xi32>
    %6 = arith.sitofp %5 : vector<8x128xi32> to vector<8x128xf32>
    %7 = vector.extract_strided_slice %0 {offsets = [0, 1], sizes = [8, 1], strides = [1, 1]} : vector<8x16xi32> to vector<8x1xi32>
    %8 = vector.broadcast %7 : vector<8x1xi32> to vector<8x128xi32>
    %9 = arith.cmpi eq, %8, %1 : vector<8x128xi32>
    %10 = arith.extui %9 : vector<8x128xi1> to vector<8x128xi32>
    %11 = arith.sitofp %10 : vector<8x128xi32> to vector<8x128xf32>
    %12 = arith.addf %6, %11 : vector<8x128xf32>
    %13 = vector.extract_strided_slice %0 {offsets = [0, 2], sizes = [8, 1], strides = [1, 1]} : vector<8x16xi32> to vector<8x1xi32>
    %14 = vector.broadcast %13 : vector<8x1xi32> to vector<8x128xi32>
    %15 = arith.cmpi eq, %14, %1 : vector<8x128xi32>
    %16 = arith.extui %15 : vector<8x128xi1> to vector<8x128xi32>
    %17 = arith.sitofp %16 : vector<8x128xi32> to vector<8x128xf32>
    %18 = arith.addf %12, %17 : vector<8x128xf32>
    %19 = vector.extract_strided_slice %0 {offsets = [0, 3], sizes = [8, 1], strides = [1, 1]} : vector<8x16xi32> to vector<8x1xi32>
    %20 = vector.broadcast %19 : vector<8x1xi32> to vector<8x128xi32>
    %21 = arith.cmpi eq, %20, %1 : vector<8x128xi32>
    %22 = arith.extui %21 : vector<8x128xi1> to vector<8x128xi32>
    %23 = arith.sitofp %22 : vector<8x128xi32> to vector<8x128xf32>
    %24 = arith.addf %18, %23 : vector<8x128xf32>
    %25 = vector.extract_strided_slice %0 {offsets = [0, 4], sizes = [8, 1], strides = [1, 1]} : vector<8x16xi32> to vector<8x1xi32>
    %26 = vector.broadcast %25 : vector<8x1xi32> to vector<8x128xi32>
    %27 = arith.cmpi eq, %26, %1 : vector<8x128xi32>
    %28 = arith.extui %27 : vector<8x128xi1> to vector<8x128xi32>
    %29 = arith.sitofp %28 : vector<8x128xi32> to vector<8x128xf32>
    %30 = arith.addf %24, %29 : vector<8x128xf32>
    %31 = vector.extract_strided_slice %0 {offsets = [0, 5], sizes = [8, 1], strides = [1, 1]} : vector<8x16xi32> to vector<8x1xi32>
    %32 = vector.broadcast %31 : vector<8x1xi32> to vector<8x128xi32>
    %33 = arith.cmpi eq, %32, %1 : vector<8x128xi32>
    %34 = arith.extui %33 : vector<8x128xi1> to vector<8x128xi32>
    %35 = arith.sitofp %34 : vector<8x128xi32> to vector<8x128xf32>
    %36 = arith.addf %30, %35 : vector<8x128xf32>
    %37 = vector.extract_strided_slice %0 {offsets = [0, 6], sizes = [8, 1], strides = [1, 1]} : vector<8x16xi32> to vector<8x1xi32>
    %38 = vector.broadcast %37 : vector<8x1xi32> to vector<8x128xi32>
    %39 = arith.cmpi eq, %38, %1 : vector<8x128xi32>
    %40 = arith.extui %39 : vector<8x128xi1> to vector<8x128xi32>
    %41 = arith.sitofp %40 : vector<8x128xi32> to vector<8x128xf32>
    %42 = arith.addf %36, %41 : vector<8x128xf32>
    %43 = vector.extract_strided_slice %0 {offsets = [0, 7], sizes = [8, 1], strides = [1, 1]} : vector<8x16xi32> to vector<8x1xi32>
    %44 = vector.broadcast %43 : vector<8x1xi32> to vector<8x128xi32>
    %45 = arith.cmpi eq, %44, %1 : vector<8x128xi32>
    %46 = arith.extui %45 : vector<8x128xi1> to vector<8x128xi32>
    %47 = arith.sitofp %46 : vector<8x128xi32> to vector<8x128xf32>
    %48 = arith.addf %42, %47 : vector<8x128xf32>
    %49 = vector.extract_strided_slice %0 {offsets = [0, 8], sizes = [8, 1], strides = [1, 1]} : vector<8x16xi32> to vector<8x1xi32>
    %50 = vector.broadcast %49 : vector<8x1xi32> to vector<8x128xi32>
    %51 = arith.cmpi eq, %50, %1 : vector<8x128xi32>
    %52 = arith.extui %51 : vector<8x128xi1> to vector<8x128xi32>
    %53 = arith.sitofp %52 : vector<8x128xi32> to vector<8x128xf32>
    %54 = arith.addf %48, %53 : vector<8x128xf32>
    %55 = vector.extract_strided_slice %0 {offsets = [0, 9], sizes = [8, 1], strides = [1, 1]} : vector<8x16xi32> to vector<8x1xi32>
    %56 = vector.broadcast %55 : vector<8x1xi32> to vector<8x128xi32>
    %57 = arith.cmpi eq, %56, %1 : vector<8x128xi32>
    %58 = arith.extui %57 : vector<8x128xi1> to vector<8x128xi32>
    %59 = arith.sitofp %58 : vector<8x128xi32> to vector<8x128xf32>
    %60 = arith.addf %54, %59 : vector<8x128xf32>
    %61 = vector.extract_strided_slice %0 {offsets = [0, 10], sizes = [8, 1], strides = [1, 1]} : vector<8x16xi32> to vector<8x1xi32>
    %62 = vector.broadcast %61 : vector<8x1xi32> to vector<8x128xi32>
    %63 = arith.cmpi eq, %62, %1 : vector<8x128xi32>
    %64 = arith.extui %63 : vector<8x128xi1> to vector<8x128xi32>
    %65 = arith.sitofp %64 : vector<8x128xi32> to vector<8x128xf32>
    %66 = arith.addf %60, %65 : vector<8x128xf32>
    %67 = vector.extract_strided_slice %0 {offsets = [0, 11], sizes = [8, 1], strides = [1, 1]} : vector<8x16xi32> to vector<8x1xi32>
    %68 = vector.broadcast %67 : vector<8x1xi32> to vector<8x128xi32>
    %69 = arith.cmpi eq, %68, %1 : vector<8x128xi32>
    %70 = arith.extui %69 : vector<8x128xi1> to vector<8x128xi32>
    %71 = arith.sitofp %70 : vector<8x128xi32> to vector<8x128xf32>
    %72 = arith.addf %66, %71 : vector<8x128xf32>
    %73 = vector.extract_strided_slice %0 {offsets = [0, 12], sizes = [8, 1], strides = [1, 1]} : vector<8x16xi32> to vector<8x1xi32>
    %74 = vector.broadcast %73 : vector<8x1xi32> to vector<8x128xi32>
    %75 = arith.cmpi eq, %74, %1 : vector<8x128xi32>
    %76 = arith.extui %75 : vector<8x128xi1> to vector<8x128xi32>
    %77 = arith.sitofp %76 : vector<8x128xi32> to vector<8x128xf32>
    %78 = arith.addf %72, %77 : vector<8x128xf32>
    %c0_1 = arith.constant 0 : index
    %c0_2 = arith.constant 0 : index
    %79 = vector.load %arg3[%c0_1, %c0_2] : memref<128x128xf32, #tpu.memory_space<vmem>>, vector<128x128xf32>
    %cst = arith.constant dense<0.000000e+00> : vector<8x128xf32>
    %80 = tpu.matmul %78, %79, %cst {dimension_numbers = #tpu.dot_dimension_numbers<[1], [0], [0], [1], [0, 0, 1, 1], [], []>} : vector<8x128xf32>, vector<128x128xf32>, vector<8x128xf32> -> vector<8x128xf32>
    %c0_3 = arith.constant 0 : index
    %c0_4 = arith.constant 0 : index
    %81 = vector.load %arg2[%c0_3, %c0_4] : memref<8x4xf32, #tpu.memory_space<vmem>>, vector<8x4xf32>
    %82 = tpu.iota {dimensions = array<i32: 1>} : vector<8x128xi32>
    %c32_i32 = arith.constant 32 : i32
    %83 = vector.broadcast %c32_i32 : i32 to vector<8x128xi32>
    %84 = arith.cmpi slt, %82, %83 : vector<8x128xi32>
    %85 = vector.extract_strided_slice %81 {offsets = [0, 1], sizes = [8, 1], strides = [1, 1]} : vector<8x4xf32> to vector<8x1xf32>
    %cst_5 = arith.constant 1.000000e+00 : f32
    %86 = vector.broadcast %cst_5 : f32 to vector<8x128xf32>
    %87 = vector.shape_cast %85 : vector<8x1xf32> to vector<8x1xf32>
    %88 = vector.broadcast %87 : vector<8x1xf32> to vector<8x128xf32>
    %89 = arith.select %84, %86, %88 : vector<8x128xi1>, vector<8x128xf32>
    %c64_i32 = arith.constant 64 : i32
    %90 = vector.broadcast %c64_i32 : i32 to vector<8x128xi32>
    %91 = arith.cmpi slt, %82, %90 : vector<8x128xi32>
    %92 = vector.extract_strided_slice %81 {offsets = [0, 2], sizes = [8, 1], strides = [1, 1]} : vector<8x4xf32> to vector<8x1xf32>
    %93 = vector.shape_cast %92 : vector<8x1xf32> to vector<8x1xf32>
    %94 = vector.broadcast %93 : vector<8x1xf32> to vector<8x128xf32>
    %95 = arith.select %91, %89, %94 : vector<8x128xi1>, vector<8x128xf32>
    %c96_i32 = arith.constant 96 : i32
    %96 = vector.broadcast %c96_i32 : i32 to vector<8x128xi32>
    %97 = arith.cmpi slt, %82, %96 : vector<8x128xi32>
    %98 = vector.extract_strided_slice %81 {offsets = [0, 3], sizes = [8, 1], strides = [1, 1]} : vector<8x4xf32> to vector<8x1xf32>
    %99 = vector.shape_cast %98 : vector<8x1xf32> to vector<8x1xf32>
    %100 = vector.broadcast %99 : vector<8x1xf32> to vector<8x128xf32>
    %101 = arith.select %97, %95, %100 : vector<8x128xi1>, vector<8x128xf32>
    %102 = arith.mulf %80, %101 : vector<8x128xf32>
    %c0_6 = arith.constant 0 : index
    %c0_7 = arith.constant 0 : index
    %103 = vector.load %arg4[%c0_6, %c0_7] : memref<8x128xf32, #tpu.memory_space<vmem>>, vector<8x128xf32>
    tpu.vector_store %arg4[%c0_6, %c0_7], %102 {strides = array<i32>} : memref<8x128xf32, #tpu.memory_space<vmem>>, vector<8x128xf32>,
    return
  }
  func.func @transform_0(%arg0: i32) -> (i32, i32) {
    %c0_i32 = arith.constant 0 : i32
    %c0_i32_0 = arith.constant 0 : i32
    return %arg0, %c0_i32 : i32, i32
  }
  func.func @transform_1(%arg0: i32) -> (i32, i32) {
    %c0_i32 = arith.constant 0 : i32
    %c0_i32_0 = arith.constant 0 : i32
    return %arg0, %c0_i32 : i32, i32
  }
  func.func @transform_2(%arg0: i32) -> (i32, i32) {
    %c0_i32 = arith.constant 0 : i32
    %c0_i32_0 = arith.constant 0 : i32
    %c0_i32_1 = arith.constant 0 : i32
    return %c0_i32, %c0_i32_0 : i32, i32
  }
  func.func @transform_3(%arg0: i32) -> (i32, i32) {
    %c0_i32 = arith.constant 0 : i32
    %c0_i32_0 = arith.constant 0 : i32
    return %arg0, %c0_i32 : i32, i32
  }
}

</mosaic_0001>

<bundles_post_ra>
// kernel: tpu_custom_call.1
= control target key start
LH: loop header
LB: loop body
LE: loop exit
PB: predicated region body
PF: predicated region fallthrough
CT: control target
= control target key end

     0   :  { %8 = vsyncpa [#allocation3], 0  ;;  %s527_s0 = inlined_call_operand.vmem [shape: s32[8,16], index: 0, kind: input, shape index: {}]   ;;  %s528_s1 = inlined_call_operand.vmem [shape: f32[8,4], index: 1, kind: input, shape index: {}]   ;;  %s529_s2 = inlined_call_operand.hbm [shape: f32[128,128], index: 2, kind: input, shape index: {}]   ;;  %s530_s3 = inlined_call_operand.hbm [shape: f32[8,128], index: 3, kind: output, shape index: {}]  }
   0x1   :  { %9 = vsyncpa [#allocation4], 0  ;;  %s419_s12 = smov [#allocation2]   ;;  %s371_s16 = scalar_lea.hbm %s529_s2, 2048 }
   0x2   :  { %s19_s13 = sshll.u32 %s419_s12, 4  ;;  %p372_p0 = scmp.ne.s32.totalorder %s529_s2, %s371_s16  ;;  %s20_s13 = int_to_ptr.vmem [resolvable:$true] %s19_s13 }
   0x3   :  { %p375_p1 = scmp.lt.u32.totalorder %s371_s16, %s529_s2 }
   0x5   :  { %p377_p2 = pnand %p375_p1, %p372_p0 }
   0x7   :  { %380 = shalt.err (!%p377_p2)
}
   0x8   :  { %s381_s21 = scalar_lea.vmem %s20_s13, 2048  ;;  %p386_p4 = scmp.lt.s32.totalorder %s20_s13, %s20_s13 }
   0x9   :  { %p382_p3 = scmp.ne.s32.totalorder %s20_s13, %s381_s21  ;;  %p387_p5 = scmp.lt.s32.totalorder %s381_s21, %s381_s21 }
   0xb   :  { %p388_p6 = por %p387_p5, %p386_p4 }
   0xd   :  { %p389_p7 = pnand %p388_p6, %p382_p3 }
   0xf   :  { %392 = shalt.err (!%p389_p7)
}
  0x10   :  { %s420_s22 = smov 128   ;;  %s421_s23 = smov 8  }
  0x11   :  { %25 = dma.hbm_to_vmem [thread:$0]  %s529_s2, 2048, %s20_s13, [#allocation3], %s420_s22, %s420_s22, %s421_s23  }
  0x12   :  { %415 = dma.done.wait [#allocation3], 2048  }
  0x13   :  { %416 = vsyncadd [#allocation3], 4294965248  ;;  %v422_v0 = vmov 2   ;;  %v423_v1 = vmov 0   ;;  %v474_v2 = vld [vmem:[%s527_s0] sm:$0xff]  ;;  %v424_v3 = vmov 3   ;;  %v30_v41 = vlaneseq }
  0x14   :  { %356 = vset.pattern.permute.xlu1 %v422_v0  ;;  %354 = vset.pattern.permute.xlu0 %v423_v1  ;;  %v425_v4 = vmov 1   ;;  %v122_v5 = vld [vmem:[#allocation2] sm:$0xff]  ;;  %v123_v6 = vld [vmem:[#allocation2 + $0x8] sm:$0xff]  ;;  %v426_v8 = vmov 0.0|0.0   ;;  %v427_v9 = vmov 4   ;;  %v428_v10 = vmov 5  }
  0x15   :  { %46 = vperm.xlu1 %356, %v474_v2   ;;  %33 = vperm.xlu0 %354, %v474_v2   ;;  %v311_v7 = vpack.c.bf16 %v123_v6, %v122_v5  ;;  %v124_v11 = vld [vmem:[#allocation2 + $0x10] sm:$0xff]  ;;  %v125_v12 = vld [vmem:[#allocation2 + $0x18] sm:$0xff]  ;;  %v126_v14 = vld [vmem:[#allocation2 + $0x20] sm:$0xff]  ;;  %v429_v16 = vmov 6   ;;  %v430_v17 = vmov 8   ;;  %v431_v22 = vmov 7  }
  0x16   :  { %310 = vmatprep.subr.bf16.mxu0 %v426_v8  ;;  %v314_v13 = vpack.c.bf16 %v125_v12, %v124_v11  ;;  %v127_v15 = vld [vmem:[#allocation2 + $0x28] sm:$0xff]  ;;  %v128_v19 = vld [vmem:[#allocation2 + $0x30] sm:$0xff]  ;;  %v129_v20 = vld [vmem:[#allocation2 + $0x38] sm:$0xff]  ;;  %v432_v23 = vmov 11   ;;  %v433_v27 = vmov 9   ;;  %v434_v31 = vmov 10  }
  0x17   :  { %312 = vmatpush3.bf16.msra.mxu0 %v311_v7  ;;  %v317_v18 = vpack.c.bf16 %v127_v15, %v126_v14  ;;  %v320_v21 = vpack.c.bf16 %v129_v20, %v128_v19  ;;  %v130_v24 = vld [vmem:[#allocation2 + $0x40] sm:$0xff]  ;;  %v131_v25 = vld [vmem:[#allocation2 + $0x48] sm:$0xff]  ;;  %v132_v28 = vld [vmem:[#allocation2 + $0x50] sm:$0xff]  ;;  %v435_v37 = vmov 12   ;;  %vm436_vm0 = vmmov 0  }
  0x18   :  { %313 = vmatprep.subr.bf16.mxu0 %v426_v8  ;;  %v323_v26 = vpack.c.bf16 %v131_v25, %v130_v24  ;;  %v133_v29 = vld [vmem:[#allocation2 + $0x58] sm:$0xff]  ;;  %v134_v32 = vld [vmem:[#allocation2 + $0x60] sm:$0xff]  ;;  %v135_v33 = vld [vmem:[#allocation2 + $0x68] sm:$0xff]  ;;  %v437_v39 = vmov 0.0   ;;  %v497_v42 = vand.u32 127, %v30_v41 }
  0x19   :  { %357 = vset.pattern.permute.xlu1 %v424_v3  ;;  %355 = vset.pattern.permute.xlu0 %v425_v4  ;;  %v326_v30 = vpack.c.bf16 %v133_v29, %v132_v28  ;;  %v329_v34 = vpack.c.bf16 %v135_v33, %v134_v32  ;;  %v136_v35 = vld [vmem:[#allocation2 + $0x70] sm:$0xff]  ;;  %v137_v36 = vld [vmem:[#allocation2 + $0x78] sm:$0xff]  ;;  %v208_v40 = vld [vmem:[%s528_s1] sm:$0xff]  ;;  %s438_s1 = smov [#allocation5]  }
  0x1a   :  { %53 = vperm.xlu1 %357, %v474_v2   ;;  %39 = vperm.xlu0 %355, %v474_v2   ;;  %v332_v38 = vpack.c.bf16 %v137_v36, %v136_v35  ;;  %vm209_vm14 = vcmp.lt.s32.totalorder %v497_v42, 32  ;;  %vm216_vm15 = vcmp.lt.s32.totalorder %v497_v42, 64  ;;  %s236_s28 = sshll.u32 %s438_s1, 4  ;;  %s237_s28 = int_to_ptr.vmem [resolvable:$true] %s236_s28 }
  0x1b   :  { %315 = vmatpush3.bf16.msra.mxu0 %v314_v13  ;;  %307 = vmatprep.mubr.msk.f32.mxu0 %vm436_vm0, %v437_v39  ;;  %vm222_vm0 = vcmp.lt.s32.totalorder %v497_v42, 96  ;;  %s393_s29 = scalar_lea.vmem %s237_s28, 128  ;;  %p398_p9 = scmp.lt.s32.totalorder %s237_s28, %s237_s28 }
  0x1c   :  { %316 = vmatprep.subr.bf16.mxu0 %v426_v8  ;;  %p394_p8 = scmp.ne.s32.totalorder %s237_s28, %s393_s29  ;;  %p399_p10 = scmp.lt.s32.totalorder %s393_s29, %s393_s29 }
  0x1e   :  { %358 = vset.pattern.permute.xlu1 %v427_v9  ;;  %359 = vset.pattern.permute.xlu0 %v428_v10  ;;  %p400_p11 = por %p399_p10, %p398_p9 }
  0x1f   :  { %60 = vperm.xlu1 %358, %v474_v2   ;;  %67 = vperm.xlu0 %359, %v474_v2  }
  0x20   :  { %318 = vmatpush3.bf16.msra.mxu0 %v317_v18  ;;  %p401_p12 = pnand %p400_p11, %p394_p8 }
  0x21   :  { %319 = vmatprep.subr.bf16.mxu0 %v426_v8 }
  0x23   :  { %360 = vset.pattern.permute.xlu1 %v429_v16  ;;  %362 = vset.pattern.permute.xlu0 %v430_v17 }
  0x24   :  { %74 = vperm.xlu1 %360, %v474_v2   ;;  %88 = vperm.xlu0 %362, %v474_v2  }
  0x25   :  { %321 = vmatpush3.bf16.msra.mxu0 %v320_v21 }
  0x26   :  { %322 = vmatprep.subr.bf16.mxu0 %v426_v8 }
  0x28   :  { %361 = vset.pattern.permute.xlu1 %v431_v22  ;;  %365 = vset.pattern.permute.xlu0 %v432_v23 }
  0x29   :  { %81 = vperm.xlu1 %361, %v474_v2   ;;  %109 = vperm.xlu0 %365, %v474_v2  }
  0x2a   :  { %324 = vmatpush3.bf16.msra.mxu0 %v323_v26 }
  0x2b   :  { %325 = vmatprep.subr.bf16.mxu0 %v426_v8 }
  0x2d   :  { %363 = vset.pattern.permute.xlu1 %v433_v27  ;;  %368 = vset.pattern.permute.xlu0 %v422_v0 }
  0x2e   :  { %95 = vperm.xlu1 %363, %v474_v2   ;;  %327 = vmatpush3.bf16.msra.mxu0 %v326_v30 }
  0x2f   :  { %328 = vmatprep.subr.bf16.mxu0 %v426_v8  ;;  %218 = vperm.xlu0 %368, %v208_v40  }
  0x32   :  { %364 = vset.pattern.permute.xlu1 %v434_v31  ;;  %330 = vmatpush3.bf16.msra.mxu0 %v329_v34 }
  0x33   :  { %102 = vperm.xlu1 %364, %v474_v2   ;;  %331 = vmatprep.subr.bf16.mxu0 %v426_v8 }
  0x34   :  { %370 = vset.pattern.permute.xlu0 %v424_v3 }
  0x36   :  { %333 = vmatpush3.bf16.msra.mxu0 %v332_v38 }
  0x37   :  { %366 = vset.pattern.permute.xlu1 %v435_v37 }
  0x38   :  { %116 = vperm.xlu1 %366, %v474_v2  }
  0x3c   :  { %367 = vset.pattern.permute.xlu1 %v425_v4 }
  0x3d   :  { %212 = vperm.xlu1 %367, %v208_v40  }
  0x41   :  { %369 = vset.pattern.permute.xlu1 %v424_v3 }
  0x42   :  { %224 = vperm.xlu1 %369, %v208_v40  }
  0x94   :  { %v47_v43 = vpop.permute.xlu1 %46  ;;  %v34_v44 = vpop.permute.xlu0 %33 }
  0x95   :  { %vm35_vm1 = vcmp.eq.s32.totalorder %v34_v44, %v497_v42  ;;  %vm48_vm2 = vcmp.eq.s32.totalorder %v47_v43, %v497_v42 }
  0x96   :  { %v245_v45 = vsel %vm35_vm1, 1.0, %v437_v39  ;;  %v247_v50 = vsel %vm48_vm2, 1.0, %v437_v39 }
  0x99   :  { %v54_v46 = vpop.permute.xlu1 %53  ;;  %v40_v47 = vpop.permute.xlu0 %39 }
  0x9a   :  { %vm41_vm3 = vcmp.eq.s32.totalorder %v40_v47, %v497_v42  ;;  %vm55_vm4 = vcmp.eq.s32.totalorder %v54_v46, %v497_v42 }
  0x9b   :  { %v246_v48 = vsel %vm41_vm3, 1.0, %v437_v39  ;;  %v248_v54 = vsel %vm55_vm4, 1.0, %v437_v39 }
  0x9c   :  { %v44_v49 = vadd.f32 %v246_v48, %v245_v45 }
  0x9e   :  { %v51_v51 = vadd.f32 %v247_v50, %v44_v49  ;;  %v61_v52 = vpop.permute.xlu1 %60  ;;  %v68_v53 = vpop.permute.xlu0 %67 }
  0x9f   :  { %vm62_vm5 = vcmp.eq.s32.totalorder %v61_v52, %v497_v42  ;;  %vm69_vm6 = vcmp.eq.s32.totalorder %v68_v53, %v497_v42 }
  0xa0   :  { %v58_v55 = vadd.f32 %v248_v54, %v51_v51  ;;  %v249_v56 = vsel %vm62_vm5, 1.0, %v437_v39  ;;  %v250_v58 = vsel %vm69_vm6, 1.0, %v437_v39 }
  0xa2   :  { %v65_v57 = vadd.f32 %v249_v56, %v58_v55 }
  0xa3   :  { %v75_v59 = vpop.permute.xlu1 %74  ;;  %v89_v62 = vpop.permute.xlu0 %88 }
  0xa4   :  { %vm76_vm7 = vcmp.eq.s32.totalorder %v75_v59, %v497_v42  ;;  %v72_v60 = vadd.f32 %v250_v58, %v65_v57  ;;  %vm90_vm9 = vcmp.eq.s32.totalorder %v89_v62, %v497_v42 }
  0xa5   :  { %v251_v61 = vsel %vm76_vm7, 1.0, %v437_v39  ;;  %v253_v3 = vsel %vm90_vm9, 1.0, %v437_v39 }
  0xa6   :  { %v79_v0 = vadd.f32 %v251_v61, %v72_v60 }
  0xa8   :  { %v82_v63 = vpop.permute.xlu1 %81  ;;  %v110_v5 = vpop.permute.xlu0 %109 }
  0xa9   :  { %vm83_vm8 = vcmp.eq.s32.totalorder %v82_v63, %v497_v42  ;;  %vm111_vm11 = vcmp.eq.s32.totalorder %v110_v5, %v497_v42 }
  0xaa   :  { %v252_v1 = vsel %vm83_vm8, 1.0, %v437_v39  ;;  %v256_v11 = vsel %vm111_vm11, 1.0, %v437_v39 }
  0xab   :  { %v86_v2 = vadd.f32 %v252_v1, %v79_v0 }
  0xad   :  { %v96_v4 = vpop.permute.xlu1 %95  ;;  %v93_v6 = vadd.f32 %v253_v3, %v86_v2 }
  0xae   :  { %vm97_vm10 = vcmp.eq.s32.totalorder %v96_v4, %v497_v42  ;;  %v219_v19 = vpop.permute.xlu0 %218 }
  0xaf   :  { %v254_v7 = vsel %vm97_vm10, 1.0, %v437_v39 }
  0xb0   :  { %v100_v9 = vadd.f32 %v254_v7, %v93_v6 }
  0xb2   :  { %v103_v8 = vpop.permute.xlu1 %102 }
  0xb3   :  { %vm104_vm12 = vcmp.eq.s32.totalorder %v103_v8, %v497_v42 }
  0xb4   :  { %v255_v10 = vsel %vm104_vm12, 1.0, %v437_v39 }
  0xb5   :  { %v107_v12 = vadd.f32 %v255_v10, %v100_v9 }
  0xb7   :  { %v114_v13 = vadd.f32 %v256_v11, %v107_v12  ;;  %v117_v14 = vpop.permute.xlu1 %116 }
  0xb8   :  { %vm118_vm13 = vcmp.eq.s32.totalorder %v117_v14, %v497_v42 }
  0xb9   :  { %v257_v15 = vsel %vm118_vm13, 1.0, %v437_v39 }
  0xba   :  { %v121_v16 = vadd.f32 %v257_v15, %v114_v13 }
  0xbc   :  { %308 = vmatmul.mubr.f32.vlgmr.msra.gmra.mrb[0].mxu0 %v121_v16  ;;  %v213_v17 = vpop.permute.xlu1 %212 }
  0xbd   :  { %v215_v18 = vsel %vm209_vm14, 1.0, %v213_v17 }
  0xbe   :  { %v221_v20 = vsel %vm216_vm15, %v215_v18, %v219_v19 }
  0xc1   :  { %v225_v21 = vpop.permute.xlu1 %224 }
  0xc2   :  { %v227_v23 = vsel %vm222_vm0, %v221_v20, %v225_v21 }
 0x18f   :  { %v204_v22 = vpop.f32.mrb[0].mxu0 }
 0x190   :  { %v228_v24 = vmul.f32 %v227_v23, %v204_v22  ;;  %v309_v25 = vpop.f32.mrb[1].mxu0 }
 0x192   :  { %229 = vst [vmem:[#allocation5] sm:$0xff] %v228_v24 }
 0x193   :  { %404 = shalt.err (!%p401_p12)
}
 0x194   :  { %s405_s5 = scalar_lea.hbm %s530_s3, 128 }
 0x195   :  { %p406_p13 = scmp.ne.s32.totalorder %s530_s3, %s405_s5  ;;  %p409_p0 = scmp.lt.u32.totalorder %s405_s5, %s530_s3 }
 0x197   :  { %p411_p1 = pnand %p409_p0, %p406_p13 }
 0x199   :  { %414 = shalt.err (!%p411_p1)
}
 0x19a   :  { %239 = dma.vmem_to_hbm [thread:$0]  %s237_s28, 128, %s530_s3, [#allocation4]  }
 0x19b   :  { %417 = dma.done.wait [#allocation4], 128  }
 0x19c   :  { %418 = vsyncadd [#allocation4], 4294967168 }
 0x19d   :  { %243 = vsyncpa [#allocation3], 1 }
 0x19e   :  { %244 = vsyncpa [#allocation4], 1 }

</bundles_post_ra>
